<compile_context>
chip_gen: v5e
topology: v5e:2x2
jax: 0.10.0
libtpu: 0.0.40
codegen_flags: <defaults>
</compile_context>

<pallas_src>
import functools

import jax
import jax.numpy as jnp
from jax.experimental import pallas as pl
from jax.experimental.pallas import tpu as pltpu


def splat_kernel(coeff_ref, emb_ref, pos_ref, splat_pos_ref, wt_ref, b_ref, out_ref):
    # influence = exp(-0.5 * ||p_t - c||^2 / scale^2); coeff = -0.5/scale^2 (SMEM scalar)
    diff = pos_ref[...] - splat_pos_ref[...]                   # (bb, T, De)
    sumsq = jnp.sum(diff * diff, axis=-1, keepdims=True)       # (bb, T, 1)
    influence = jnp.exp(sumsq * coeff_ref[0])                  # (bb, T, 1), f32

    # gathered_b = sum_t influence_bt * emb_bt  -> one row per sequence in the block
    weighted = emb_ref[...].astype(jnp.float32) * influence    # (bb, T, Dm)
    gathered = jnp.sum(weighted, axis=1)                       # (bb, Dm)

    # (bb, Dm) x (Dm, Dm) on the MXU.  wt_ref already holds W^T (pre-transposed
    # in the wrapper), so this is a plain row-major contraction -> no in-kernel
    # transpose.  Cast of the LHS is a no-op for the default f32 path.
    lhs = gathered.astype(wt_ref.dtype)
    transformed = jax.lax.dot_general(
        lhs, wt_ref[...],
        dimension_numbers=(((1,), (0,)), ((), ())),
        preferred_element_type=jnp.float32) + b_ref[...]       # (bb, Dm)

    # redistribute: broadcast each sequence's row over its T tokens, re-weight.
    out_ref[...] = (jnp.expand_dims(transformed, 1) * influence).astype(out_ref.dtype)


def _pick_block_rows(batch, cap=128):
    bb = min(batch, cap)
    while batch % bb:
        bb -= 1
    return bb


@functools.partial(jax.jit, static_argnames=("block_rows", "mxu_dtype"))
def _splat_call(token_embeddings, token_positions, position, scale, w, b,
                block_rows, mxu_dtype):
    B, T, Dm = token_embeddings.shape
    De = token_positions.shape[-1]
    bb = block_rows

    emb = token_embeddings.astype(jnp.float32)                 # (B, T, Dm)
    pos = token_positions.astype(jnp.float32)                  # (B, T, De)
    splat_pos = position.reshape(1, 1, De).astype(jnp.float32)  # (1, 1, De)
    coeff = (-0.5 / (scale.astype(jnp.float32) ** 2)).reshape(1)  # (1,) -> SMEM
    w_t = w.astype(mxu_dtype).T                                 # (Dm_in, Dm_out), transposed once
    bias = b.reshape(1, Dm).astype(jnp.float32)                 # (1, Dm)

    grid = (B // bb,)
    cost = pl.CostEstimate(
        flops=int(2 * B * Dm * Dm + 5 * B * T * Dm + 3 * B * T * De),
        transcendentals=int(B * T),
        bytes_accessed=int(4 * (2 * B * T * Dm + B * T * De)
                           + Dm * Dm * jnp.dtype(mxu_dtype).itemsize),
    )

    return pl.pallas_call(
        splat_kernel,
        out_shape=jax.ShapeDtypeStruct((B, T, Dm), jnp.float32),
        grid=grid,
        in_specs=[
            pl.BlockSpec(memory_space=pltpu.MemorySpace.SMEM),     # coeff (scalar)
            pl.BlockSpec((bb, T, Dm), lambda i: (i, 0, 0)),        # emb   (pipelined)
            pl.BlockSpec((bb, T, De), lambda i: (i, 0, 0)),        # pos   (pipelined)
            pl.BlockSpec((1, 1, De), lambda i: (0, 0, 0)),         # splat position
            pl.BlockSpec((Dm, Dm), lambda i: (0, 0)),              # W^T (resident)
            pl.BlockSpec((1, Dm), lambda i: (0, 0)),               # bias (resident)
        ],
        out_specs=pl.BlockSpec((bb, T, Dm), lambda i: (i, 0, 0)),
        compiler_params=pltpu.CompilerParams(
            dimension_semantics=("parallel",)),                    # 2x on v7x megacore
        cost_estimate=cost,
    )(coeff, emb, pos, splat_pos, w_t, bias)


def minimal_splat_forward_batched(token_embeddings, token_positions, position,
                                  scale, w, b, block_rows=None,
                                  mxu_dtype=jnp.float32):
    """Batched forward: (B, T, Dm), (B, T, De) -> (B, T, Dm).

    Each batch element is an independent sequence processed exactly like
    MinimalSplat.forward.  Set mxu_dtype=jnp.bfloat16 for the v6e/v7x
    throughput path (relaxed numerics)."""
    B = token_embeddings.shape[0]
    bb = block_rows if block_rows is not None else _pick_block_rows(B)
    return _splat_call(token_embeddings, token_positions, position, scale, w, b,
                       block_rows=bb, mxu_dtype=mxu_dtype)


def minimal_splat_forward(token_embeddings, token_positions, position, scale, w, b):
    """Original per-sequence interface: (T, Dm), (T, De) -> (T, Dm)."""
    out = minimal_splat_forward_batched(token_embeddings[None], token_positions[None],
                                        position, scale, w, b, block_rows=1)
    return out[0]


def reference_forward(token_embeddings, token_positions, position, scale, w, b):
    dist = jnp.linalg.norm(token_positions - position[None, :], axis=-1)
    influence = jnp.exp(-0.5 * (dist / scale[0]) ** 2)
    weighted = token_embeddings * influence[:, None]
    gathered = jnp.sum(weighted, axis=0, keepdims=True)
    transformed = gathered @ w.T + b
    return transformed * influence[:, None]


if __name__ == "__main__":
    embedding_dim = 64
    model_dim = 128
    seq = 8
    batch = 16          # number of independent sequences batched into one call

    key = jax.random.PRNGKey(0)
    k_pos, k_w, k_b, k_emb, k_tokpos = jax.random.split(key, 5)

    # Deterministic parameter init (shapes per MinimalSplat.__init__).
    position = jax.random.normal(k_pos, (embedding_dim,), jnp.float32) * 0.5
    scale = jnp.ones((1,), jnp.float32)
    bound = 1.0 / (model_dim ** 0.5)
    w = jax.random.uniform(k_w, (model_dim, model_dim), jnp.float32, -bound, bound)
    b = jax.random.uniform(k_b, (model_dim,), jnp.float32, -bound, bound)

    # Batched inputs: `batch` independent sequences.
    token_embeddings = jax.random.normal(k_emb, (batch, seq, model_dim), jnp.float32)
    token_positions = jax.random.normal(k_tokpos, (batch, seq, embedding_dim), jnp.float32)

    out = minimal_splat_forward_batched(token_embeddings, token_positions,
                                        position, scale, w, b)
    out = jax.block_until_ready(out)
    assert out.shape == (batch, seq, model_dim)

    # Correctness vs. the per-sequence reference (original module semantics).
    for i in range(batch):
        ref_i = reference_forward(token_embeddings[i], token_positions[i],
                                  position, scale, w, b)
        assert jnp.allclose(out[i], ref_i, atol=1e-4, rtol=1e-4)

    # Original per-sequence interface (B=1 path) still matches.
    single = jax.block_until_ready(
        minimal_splat_forward(token_embeddings[0], token_positions[0],
                              position, scale, w, b))
    ref0 = reference_forward(token_embeddings[0], token_positions[0],
                             position, scale, w, b)
    assert jnp.allclose(single, ref0, atol=1e-4, rtol=1e-4)

    print("KERNEL_OK")
</pallas_src>

<mosaic_0001>
module attributes {stable_mosaic.version = 11 : i64} {
  func.func @splat_kernel(%arg0: i32, %arg1: memref<1xf32, #tpu.memory_space<smem>>, %arg2: memref<16x8x128xf32, #tpu.memory_space<vmem>>, %arg3: memref<16x8x64xf32, #tpu.memory_space<vmem>>, %arg4: memref<1x1x64xf32, #tpu.memory_space<vmem>>, %arg5: memref<128x128xf32, #tpu.memory_space<vmem>>, %arg6: memref<1x128xf32, #tpu.memory_space<vmem>>, %arg7: memref<16x8x128xf32, #tpu.memory_space<vmem>>) attributes {dimension_semantics = [#tpu.dimension_semantics<parallel>], iteration_bounds = array<i64: 1>, scalar_prefetch = 0 : i64, scratch_operands = 0 : i64, tpu.core_type = #tpu.core_type<tc>, window_params = [{transform_indices = @transform_0, window_bounds = array<i64: 1>}, {transform_indices = @transform_1, window_bounds = array<i64: 16, 8, 128>}, {transform_indices = @transform_2, window_bounds = array<i64: 16, 8, 64>}, {pipeline_mode = #tpu.pipeline_mode<synchronous>, transform_indices = @transform_3, window_bounds = array<i64: 1, 1, 64>}, {pipeline_mode = #tpu.pipeline_mode<synchronous>, transform_indices = @transform_4, window_bounds = array<i64: 128, 128>}, {pipeline_mode = #tpu.pipeline_mode<synchronous>, transform_indices = @transform_5, window_bounds = array<i64: 1, 128>}, {transform_indices = @transform_6, window_bounds = array<i64: 16, 8, 128>}]} {
    %c0 = arith.constant 0 : index
    %c0_0 = arith.constant 0 : index
    %c0_1 = arith.constant 0 : index
    %0 = vector.load %arg3[%c0, %c0_0, %c0_1] : memref<16x8x64xf32, #tpu.memory_space<vmem>>, vector<16x8x64xf32>
    %c0_2 = arith.constant 0 : index
    %c0_3 = arith.constant 0 : index
    %c0_4 = arith.constant 0 : index
    %1 = vector.load %arg4[%c0_2, %c0_3, %c0_4] : memref<1x1x64xf32, #tpu.memory_space<vmem>>, vector<1x1x64xf32>
    %2 = vector.broadcast %1 : vector<1x1x64xf32> to vector<16x8x64xf32>
    %3 = arith.subf %0, %2 : vector<16x8x64xf32>
    %4 = arith.mulf %3, %3 : vector<16x8x64xf32>
    %cst = arith.constant dense<0.000000e+00> : vector<16x8xf32>
    %5 = vector.multi_reduction <add>, %4, %cst [2] : vector<16x8x64xf32> to vector<16x8xf32>
    %6 = vector.shape_cast %5 : vector<16x8xf32> to vector<16x8x1xf32>
    %c0_5 = arith.constant 0 : index
    %7 = memref.load %arg1[%c0_5] : memref<1xf32, #tpu.memory_space<smem>>
    %8 = vector.broadcast %7 : f32 to vector<16x8x1xf32>
    %9 = arith.mulf %6, %8 : vector<16x8x1xf32>
    %10 = math.exp %9 : vector<16x8x1xf32>
    %c0_6 = arith.constant 0 : index
    %c0_7 = arith.constant 0 : index
    %c0_8 = arith.constant 0 : index
    %11 = vector.load %arg2[%c0_6, %c0_7, %c0_8] : memref<16x8x128xf32, #tpu.memory_space<vmem>>, vector<16x8x128xf32>
    %12 = vector.broadcast %10 : vector<16x8x1xf32> to vector<16x8x128xf32>
    %13 = arith.mulf %11, %12 : vector<16x8x128xf32>
    %cst_9 = arith.constant dense<0.000000e+00> : vector<16x128xf32>
    %14 = vector.multi_reduction <add>, %13, %cst_9 [1] : vector<16x8x128xf32> to vector<16x128xf32>
    %c0_10 = arith.constant 0 : index
    %c0_11 = arith.constant 0 : index
    %15 = vector.load %arg5[%c0_10, %c0_11] : memref<128x128xf32, #tpu.memory_space<vmem>>, vector<128x128xf32>
    %cst_12 = arith.constant dense<0.000000e+00> : vector<16x128xf32>
    %16 = tpu.matmul %14, %15, %cst_12 {dimension_numbers = #tpu.dot_dimension_numbers<[1], [0], [0], [1], [0, 0, 1, 1], [], []>} : vector<16x128xf32>, vector<128x128xf32>, vector<16x128xf32> -> vector<16x128xf32>
    %c0_13 = arith.constant 0 : index
    %c0_14 = arith.constant 0 : index
    %17 = vector.load %arg6[%c0_13, %c0_14] : memref<1x128xf32, #tpu.memory_space<vmem>>, vector<1x128xf32>
    %18 = vector.broadcast %17 : vector<1x128xf32> to vector<16x128xf32>
    %19 = arith.addf %16, %18 : vector<16x128xf32>
    %20 = vector.shape_cast %19 : vector<16x128xf32> to vector<16x1x128xf32>
    %21 = vector.broadcast %20 : vector<16x1x128xf32> to vector<16x8x128xf32>
    %22 = vector.broadcast %10 : vector<16x8x1xf32> to vector<16x8x128xf32>
    %23 = arith.mulf %21, %22 : vector<16x8x128xf32>
    %c0_15 = arith.constant 0 : index
    %c0_16 = arith.constant 0 : index
    %c0_17 = arith.constant 0 : index
    %24 = vector.load %arg7[%c0_15, %c0_16, %c0_17] : memref<16x8x128xf32, #tpu.memory_space<vmem>>, vector<16x8x128xf32>
    tpu.vector_store %arg7[%c0_15, %c0_16, %c0_17], %23 {strides = array<i32>} : memref<16x8x128xf32, #tpu.memory_space<vmem>>, vector<16x8x128xf32>,
    return
  }
  func.func @transform_0(%arg0: i32) -> i32 {
    %c0_i32 = arith.constant 0 : i32
    %c0_i32_0 = arith.constant 0 : i32
    return %c0_i32 : i32
  }
  func.func @transform_1(%arg0: i32) -> (i32, i32, i32) {
    %c0_i32 = arith.constant 0 : i32
    %c0_i32_0 = arith.constant 0 : i32
    %c0_i32_1 = arith.constant 0 : i32
    return %arg0, %c0_i32, %c0_i32_0 : i32, i32, i32
  }
  func.func @transform_2(%arg0: i32) -> (i32, i32, i32) {
    %c0_i32 = arith.constant 0 : i32
    %c0_i32_0 = arith.constant 0 : i32
    %c0_i32_1 = arith.constant 0 : i32
    return %arg0, %c0_i32, %c0_i32_0 : i32, i32, i32
  }
  func.func @transform_3(%arg0: i32) -> (i32, i32, i32) {
    %c0_i32 = arith.constant 0 : i32
    %c0_i32_0 = arith.constant 0 : i32
    %c0_i32_1 = arith.constant 0 : i32
    %c0_i32_2 = arith.constant 0 : i32
    return %c0_i32, %c0_i32_0, %c0_i32_1 : i32, i32, i32
  }
  func.func @transform_4(%arg0: i32) -> (i32, i32) {
    %c0_i32 = arith.constant 0 : i32
    %c0_i32_0 = arith.constant 0 : i32
    %c0_i32_1 = arith.constant 0 : i32
    return %c0_i32, %c0_i32_0 : i32, i32
  }
  func.func @transform_5(%arg0: i32) -> (i32, i32) {
    %c0_i32 = arith.constant 0 : i32
    %c0_i32_0 = arith.constant 0 : i32
    %c0_i32_1 = arith.constant 0 : i32
    return %c0_i32, %c0_i32_0 : i32, i32
  }
  func.func @transform_6(%arg0: i32) -> (i32, i32, i32) {
    %c0_i32 = arith.constant 0 : i32
    %c0_i32_0 = arith.constant 0 : i32
    %c0_i32_1 = arith.constant 0 : i32
    return %arg0, %c0_i32, %c0_i32_0 : i32, i32, i32
  }
}

</mosaic_0001>

<bundles_post_ra>
// kernel: _splat_call.1
= control target key start
LH: loop header
LB: loop body
LE: loop exit
PB: predicated region body
PF: predicated region fallthrough
CT: control target
= control target key end

     0   :  { %vm77_vm0 = vcmask 523264   ;;  %s889_s0 = inlined_call_operand.<no memory space> [shape: f32[1], index: 0, kind: input, shape index: {}]   ;;  %s890_s1 = inlined_call_operand.vmem [shape: f32[16,8,128], index: 1, kind: input, shape index: {}]   ;;  %s891_s2 = inlined_call_operand.vmem [shape: f32[16,8,64], index: 2, kind: input, shape index: {}]   ;;  %s892_s3 = inlined_call_operand.vmem [shape: f32[1,1,64], index: 3, kind: input, shape index: {}]   ;;  %s893_s4 = inlined_call_operand.vmem [shape: f32[128,128], index: 4, kind: input, shape index: {}]   ;;  %s894_s5 = inlined_call_operand.vmem [shape: f32[1,128], index: 5, kind: input, shape index: {}]   ;;  %s895_s6 = inlined_call_operand.hbm [shape: f32[16,8,128], index: 6, kind: output, shape index: {}]  }
   0x1   :  { %v33_v0 = vld [vmem:[%s891_s2 + $0x40] sm:$0xff]  ;;  %v27_v3 = vld [vmem:[%s891_s2 + $0x10] sm:$0xff]  ;;  %v34_v4 = vld [vmem:[%s891_s2 + $0x48] sm:$0xff] }
   0x2   :  { %v607_v1 = vld [vmem:[%s892_s3] ss:$0 sm:$0xff]  ;;  %v26_v8 = vld [vmem:[%s891_s2 + $0x8] sm:$0xff]  ;;  %v35_v9 = vld [vmem:[%s891_s2 + $0x50] sm:$0xff] }
   0x3   :  { %v25_v2 = vld [vmem:[%s891_s2] sm:$0xff]  ;;  %v53_v5 = vsub.f32 %v33_v0, %v607_v1  ;;  %v47_v7 = vsub.f32 %v27_v3, %v607_v1  ;;  %v54_v10 = vsub.f32 %v34_v4, %v607_v1  ;;  %v46_v14 = vsub.f32 %v26_v8, %v607_v1 }
   0x4   :  { %v45_v6 = vsub.f32 %v25_v2, %v607_v1  ;;  %v55_v15 = vsub.f32 %v35_v9, %v607_v1 }
   0x5   :  { %v69_v11 = vmul.f32 %v53_v5, %v53_v5  ;;  %v63_v13 = vmul.f32 %v47_v7, %v47_v7 }
   0x6   :  { %v61_v12 = vmul.f32 %v45_v6, %v45_v6 }
   0x7   :  { %v102_v16 = vsel %vm77_vm0, %v69_v11, 0.0  ;;  %v84_v18 = vsel %vm77_vm0, %v63_v13, 0.0 }
   0x8   :  { %v78_v17 = vsel %vm77_vm0, %v61_v12, 0.0 }
   0x9   :  { %12 = vsyncpa [#allocation4], 0  ;;  %103 = vadd.xlane.f32.xlu1 %v102_v16  ;;  %79 = vadd.xlane.f32.xlu0 %v78_v17  ;;  %v70_v19 = vmul.f32 %v54_v10, %v54_v10  ;;  %v62_v20 = vmul.f32 %v46_v14, %v46_v14  ;;  %v71_v21 = vmul.f32 %v55_v15, %v55_v15  ;;  %v36_v22 = vld [vmem:[%s891_s2 + $0x58] sm:$0xff]  ;;  %v29_v24 = vld [vmem:[%s891_s2 + $0x20] sm:$0xff]  ;;  %v689_v2 = vstv %s889_s0  ;;  %s472_s18 = sshll.u32 %s895_s6, 4  ;;  %s564_s19 = smov 128   ;;  %s473_s18 = int_to_ptr.hbm [resolvable:$true] %s472_s18 }
   0xa   :  { %85 = vadd.xlane.f32.xlu2 %v84_v18  ;;  %v28_v23 = vld [vmem:[%s891_s2 + $0x18] sm:$0xff]  ;;  %v56_v27 = vsub.f32 %v36_v22, %v607_v1  ;;  %v49_v30 = vsub.f32 %v29_v24, %v607_v1  ;;  %v30_v34 = vld [vmem:[%s891_s2 + $0x28] sm:$0xff]  ;;  %v37_v35 = vld [vmem:[%s891_s2 + $0x60] sm:$0xff]  ;;  %vm340_vm1 = vcmask 1041409   ;;  %vm342_vm2 = vcmask 1042434   ;;  %s565_s20 = smov 8  }
   0xb   :  { %v105_v25 = vsel %vm77_vm0, %v70_v19, 0.0  ;;  %v81_v26 = vsel %vm77_vm0, %v62_v20, 0.0  ;;  %v48_v28 = vsub.f32 %v28_v23, %v607_v1  ;;  %v108_v29 = vsel %vm77_vm0, %v71_v21, 0.0  ;;  %v38_v36 = vld [vmem:[%s891_s2 + $0x68] sm:$0xff]  ;;  %v39_v46 = vld [vmem:[%s891_s2 + $0x70] sm:$0xff]  ;;  %v32_v48 = vld [vmem:[%s891_s2 + $0x38] sm:$0xff] }
   0xc   :  { %v72_v31 = vmul.f32 %v56_v27, %v56_v27  ;;  %v65_v33 = vmul.f32 %v49_v30, %v49_v30  ;;  %v50_v39 = vsub.f32 %v30_v34, %v607_v1  ;;  %v57_v40 = vsub.f32 %v37_v35, %v607_v1  ;;  %v31_v47 = vld [vmem:[%s891_s2 + $0x30] sm:$0xff]  ;;  %v40_v58 = vld [vmem:[%s891_s2 + $0x78] sm:$0xff]  ;;  %v317_v10 = vld [vmem:[%s893_s4 + $0x68] sm:$0xff] }
   0xd   :  { %v64_v32 = vmul.f32 %v48_v28, %v48_v28  ;;  %v58_v42 = vsub.f32 %v38_v36, %v607_v1  ;;  %v59_v51 = vsub.f32 %v39_v46, %v607_v1  ;;  %v51_v52 = vsub.f32 %v31_v47, %v607_v1  ;;  %v318_v7 = vld [vmem:[%s893_s4 + $0x70] sm:$0xff]  ;;  %v316_v12 = vld [vmem:[%s893_s4 + $0x60] sm:$0xff]  ;;  %v315_v16 = vld [vmem:[%s893_s4 + $0x58] sm:$0xff] }
   0xe   :  { %v111_v37 = vsel %vm77_vm0, %v72_v31, 0.0  ;;  %v90_v41 = vsel %vm77_vm0, %v65_v33, 0.0  ;;  %v66_v43 = vmul.f32 %v50_v39, %v50_v39  ;;  %v73_v44 = vmul.f32 %v57_v40, %v57_v40  ;;  %v314_v22 = vld [vmem:[%s893_s4 + $0x50] sm:$0xff]  ;;  %v184_v27 = vld [vmem:[%s890_s1 + $0x40] sm:$0xff]  ;;  %v311_v33 = vld [vmem:[%s893_s4 + $0x38] sm:$0xff] }
   0xf   :  { %v87_v38 = vsel %vm77_vm0, %v64_v32, 0.0  ;;  %v74_v45 = vmul.f32 %v58_v42, %v58_v42  ;;  %v52_v54 = vsub.f32 %v32_v48, %v607_v1  ;;  %v75_v55 = vmul.f32 %v59_v51, %v59_v51  ;;  %v176_v35 = vld [vmem:[%s890_s1] sm:$0xff]  ;;  %v177_v39 = vld [vmem:[%s890_s1 + $0x8] sm:$0xff] }
  0x10   :  { %v93_v49 = vsel %vm77_vm0, %v66_v43, 0.0  ;;  %v114_v50 = vsel %vm77_vm0, %v73_v44, 0.0  ;;  %v67_v56 = vmul.f32 %v51_v52, %v51_v52  ;;  %v60_v61 = vsub.f32 %v40_v58, %v607_v1  ;;  %v319_v1 = vld [vmem:[%s893_s4 + $0x78] sm:$0xff]  ;;  %v178_v43 = vld [vmem:[%s890_s1 + $0x10] sm:$0xff]  ;;  %v185_v51 = vld [vmem:[%s890_s1 + $0x48] sm:$0xff] }
  0x11   :  { %106 = vadd.xlane.f32.xlu1 %v105_v25  ;;  %82 = vadd.xlane.f32.xlu0 %v81_v26  ;;  %v117_v53 = vsel %vm77_vm0, %v74_v45, 0.0  ;;  %v68_v57 = vmul.f32 %v52_v54, %v52_v54  ;;  %v120_v59 = vsel %vm77_vm0, %v75_v55, 0.0  ;;  %v313_v25 = vld [vmem:[%s893_s4 + $0x48] sm:$0xff]  ;;  %v308_v55 = vld [vmem:[%s893_s4 + $0x20] sm:$0xff]  ;;  %v186_v58 = vld [vmem:[%s890_s1 + $0x50] sm:$0xff]  ;;  %vm344_vm3 = vcmask 1043459  }
  0x12   :  { %109 = vadd.xlane.f32.xlu2 %v108_v29  ;;  %v96_v60 = vsel %vm77_vm0, %v67_v56, 0.0  ;;  %v76_v63 = vmul.f32 %v60_v61, %v60_v61  ;;  %363 = vmatpush.msra.mxu0 %v319_v1  ;;  %v312_v29 = vld [vmem:[%s893_s4 + $0x40] sm:$0xff]  ;;  %v307_v56 = vld [vmem:[%s893_s4 + $0x18] sm:$0xff]  ;;  %vm346_vm4 = vcmask 1044484   ;;  %vm348_vm5 = vcmask 1045509  }
  0x13   :  { %v99_v62 = vsel %vm77_vm0, %v68_v57, 0.0  ;;  %484 = vmatpush.msra.mxu1 %v319_v1  ;;  %vm350_vm6 = vcmask 1046534   ;;  %vm352_vm7 = vcmask 1047559  }
  0x14   :  { %v123_v0 = vsel %vm77_vm0, %v76_v63, 0.0  ;;  %364 = vmatpush.msra.mxu0 %v318_v7 }
  0x15   :  { %485 = vmatpush.msra.mxu1 %v318_v7 }
  0x16   :  { %365 = vmatpush.msra.mxu0 %v317_v10 }
  0x17   :  { %486 = vmatpush.msra.mxu1 %v317_v10  ;;  %v187_v10 = vld [vmem:[%s890_s1 + $0x58] sm:$0xff] }
  0x18   :  { %366 = vmatpush.msra.mxu0 %v316_v12 }
  0x19   :  { %112 = vadd.xlane.f32.xlu1 %v111_v37  ;;  %88 = vadd.xlane.f32.xlu0 %v87_v38 }
  0x1a   :  { %91 = vadd.xlane.f32.xlu2 %v90_v41  ;;  %487 = vmatpush.msra.mxu1 %v316_v12  ;;  %v310_v41 = vld [vmem:[%s893_s4 + $0x30] sm:$0xff] }
  0x1b   :  { %367 = vmatpush.msra.mxu0 %v315_v16 }
  0x1c   :  { %488 = vmatpush.msra.mxu1 %v315_v16 }
  0x1d   :  { %368 = vmatpush.msra.mxu0 %v314_v22 }
  0x1e   :  { %489 = vmatpush.msra.mxu1 %v314_v22 }
  0x1f   :  { %369 = vmatpush.msra.mxu0 %v313_v25 }
  0x20   :  { %490 = vmatpush.msra.mxu1 %v313_v25 }
  0x21   :  { %94 = vadd.xlane.f32.xlu1 %v93_v49  ;;  %115 = vadd.xlane.f32.xlu0 %v114_v50  ;;  %v309_v49 = vld [vmem:[%s893_s4 + $0x28] sm:$0xff] }
  0x22   :  { %118 = vadd.xlane.f32.xlu2 %v117_v53  ;;  %370 = vmatpush.msra.mxu0 %v312_v29 }
  0x23   :  { %491 = vmatpush.msra.mxu1 %v312_v29 }
  0x24   :  { %371 = vmatpush.msra.mxu0 %v311_v33 }
  0x25   :  { %492 = vmatpush.msra.mxu1 %v311_v33 }
  0x26   :  { %372 = vmatpush.msra.mxu0 %v310_v41 }
  0x27   :  { %493 = vmatpush.msra.mxu1 %v310_v41 }
  0x28   :  { %373 = vmatpush.msra.mxu0 %v309_v49 }
  0x29   :  { %121 = vadd.xlane.f32.xlu1 %v120_v59  ;;  %97 = vadd.xlane.f32.xlu0 %v96_v60 }
  0x2a   :  { %100 = vadd.xlane.f32.xlu2 %v99_v62  ;;  %494 = vmatpush.msra.mxu1 %v309_v49 }
  0x2b   :  { %374 = vmatpush.msra.mxu0 %v308_v55 }
  0x2c   :  { %495 = vmatpush.msra.mxu1 %v308_v55 }
  0x2d   :  { %375 = vmatpush.msra.mxu0 %v307_v56 }
  0x2e   :  { %496 = vmatpush.msra.mxu1 %v307_v56 }
  0x31   :  { %124 = vadd.xlane.f32.xlu0 %v123_v0  ;;  %v306_v0 = vld [vmem:[%s893_s4 + $0x10] sm:$0xff] }
  0x32   :  { %376 = vmatpush.msra.mxu0 %v306_v0  ;;  %497 = vmatpush.msra.mxu1 %v306_v0 }
  0x7c   :  { %v104_v3 = vpop.xlane.xlu1 %103  ;;  %v80_v4 = vpop.xlane.xlu0 %79 }
  0x7d   :  { %v136_v5 = vmul.f32 %v689_v2, %v104_v3  ;;  %v86_v6 = vpop.xlane.xlu2 %85  ;;  %v128_v9 = vmul.f32 %v689_v2, %v80_v4 }
  0x7e   :  { %v130_v11 = vmul.f32 %v689_v2, %v86_v6 }
  0x7f   :  { %v160_v8 = vmul.f32 1.442695, %v136_v5  ;;  %v144_v13 = vmul.f32 1.442695, %v128_v9 }
  0x80   :  { %v148_v17 = vmul.f32 1.442695, %v130_v11  ;;  %v179_v11 = vld [vmem:[%s890_s1 + $0x18] sm:$0xff] }
  0x81   :  { %505 = vpow2.f32 %v160_v8  ;;  %v305_v8 = vld [vmem:[%s893_s4 + $0x8] sm:$0xff] }
  0x82   :  { %507 = vpow2.f32 %v144_v13  ;;  %377 = vmatpush.msra.mxu0 %v305_v8  ;;  %498 = vmatpush.msra.mxu1 %v305_v8 }
  0x83   :  { %509 = vpow2.f32 %v148_v17 }
  0x84   :  { %v107_v14 = vpop.xlane.xlu1 %106  ;;  %v83_v15 = vpop.xlane.xlu0 %82 }
  0x85   :  { %v137_v18 = vmul.f32 %v689_v2, %v107_v14  ;;  %v129_v19 = vmul.f32 %v689_v2, %v83_v15  ;;  %v110_v20 = vpop.xlane.xlu2 %109 }
  0x86   :  { %v138_v21 = vmul.f32 %v689_v2, %v110_v20 }
  0x87   :  { %v162_v23 = vmul.f32 1.442695, %v137_v18  ;;  %v146_v24 = vmul.f32 1.442695, %v129_v19  ;;  %v718_v26 = vpop.eup %505  ;;  %v304_v18 = vld [vmem:[%s893_s4] sm:$0xff] }
  0x88   :  { %v164_v28 = vmul.f32 1.442695, %v138_v21  ;;  %v200_v30 = vmul.f32 %v718_v26, %v184_v27  ;;  %v730_v34 = vpop.eup %507  ;;  %v180_v27 = vld [vmem:[%s890_s1 + $0x20] sm:$0xff]  ;;  %378 = vmatpush.msra.mxu0 %v304_v18  ;;  %499 = vmatpush.msra.mxu1 %v304_v18 }
  0x89   :  { %511 = vpow2.f32 %v146_v24  ;;  %v744_v42 = vpop.eup %509  ;;  %v192_v48 = vmul.f32 %v730_v34, %v176_v35 }
  0x8a   :  { %513 = vpow2.f32 %v162_v23  ;;  %v256_v47 = vrot.slane %v200_v30, 4  ;;  %v194_v54 = vmul.f32 %v744_v42, %v178_v43 }
  0x8b   :  { %515 = vpow2.f32 %v164_v28  ;;  %v208_v60 = vrot.slane %v192_v48, 4 }
  0x8c   :  { %v113_v31 = vpop.xlane.xlu1 %112  ;;  %v89_v32 = vpop.xlane.xlu0 %88  ;;  %v257_v59 = vadd.f32 %v256_v47, %v200_v30  ;;  %v220_v5 = vrot.slane %v194_v54, 4 }
  0x8d   :  { %v139_v36 = vmul.f32 %v689_v2, %v113_v31  ;;  %v131_v37 = vmul.f32 %v689_v2, %v89_v32  ;;  %v92_v38 = vpop.xlane.xlu2 %91  ;;  %v209_v15 = vadd.f32 %v208_v60, %v192_v48 }
  0x8e   :  { %v132_v40 = vmul.f32 %v689_v2, %v92_v38  ;;  %v258_v14 = vrot.slane %v257_v59, 2  ;;  %v221_v22 = vadd.f32 %v220_v5, %v194_v54  ;;  %v181_v38 = vld [vmem:[%s890_s1 + $0x28] sm:$0xff] }
  0x8f   :  { %v166_v44 = vmul.f32 1.442695, %v139_v36  ;;  %v150_v45 = vmul.f32 1.442695, %v131_v37  ;;  %v749_v46 = vpop.eup %511  ;;  %v210_v30 = vrot.slane %v209_v15, 2 }
  0x90   :  { %v755_v50 = vpop.eup %513  ;;  %v193_v52 = vmul.f32 %v749_v46, %v177_v39  ;;  %v152_v53 = vmul.f32 1.442695, %v132_v40  ;;  %v804_v29 = vadd.f32 %v258_v14, %v257_v59  ;;  %v222_v41 = vrot.slane %v221_v22, 2 }
  0x91   :  { %517 = vpow2.f32 %v166_v44  ;;  %v768_v57 = vpop.eup %515  ;;  %v201_v61 = vmul.f32 %v755_v50, %v185_v51  ;;  %v188_v51 = vld [vmem:[%s890_s1 + $0x60] sm:$0xff]  ;;  %v211_v55 = vadd.f32 %v210_v30, %v209_v15 }
  0x92   :  { %519 = vpow2.f32 %v150_v45  ;;  %v214_v3 = vrot.slane %v193_v52, 4  ;;  %v202_v6 = vmul.f32 %v768_v57, %v186_v58  ;;  %v260_v54 = vrot.slane %v804_v29, 1 }
  0x93   :  { %521 = vpow2.f32 %v152_v53  ;;  %v262_v16 = vrot.slane %v201_v61, 4 }
  0x94   :  { %v95_v62 = vpop.xlane.xlu1 %94  ;;  %v116_v63 = vpop.xlane.xlu0 %115  ;;  %v215_v20 = vadd.f32 %v214_v3, %v193_v52  ;;  %v268_v23 = vrot.slane %v202_v6, 4 }
  0x95   :  { %v133_v4 = vmul.f32 %v689_v2, %v95_v62  ;;  %v119_v1 = vpop.xlane.xlu2 %118  ;;  %v140_v7 = vmul.f32 %v689_v2, %v116_v63  ;;  %v263_v31 = vadd.f32 %v262_v16, %v201_v61  ;;  %v189_v62 = vld [vmem:[%s890_s1 + $0x68] sm:$0xff] }
  0x96   :  { %v141_v13 = vmul.f32 %v689_v2, %v119_v1  ;;  %v216_v36 = vrot.slane %v215_v20, 2  ;;  %v269_v43 = vadd.f32 %v268_v23, %v202_v6  ;;  %v223_v6 = vadd.f32 %v222_v41, %v221_v22  ;;  %v183_v41 = vld [vmem:[%s890_s1 + $0x38] sm:$0xff] }
  0x97   :  { %v783_v9 = vpop.eup %517  ;;  %v154_v12 = vmul.f32 1.442695, %v133_v4  ;;  %v168_v17 = vmul.f32 1.442695, %v140_v7  ;;  %v264_v60 = vrot.slane %v263_v31, 2 }
  0x98   :  { %v795_v19 = vpop.eup %519  ;;  %v170_v21 = vmul.f32 1.442695, %v141_v13  ;;  %v203_v24 = vmul.f32 %v783_v9, %v187_v10  ;;  %v217_v61 = vadd.f32 %v216_v36, %v215_v20  ;;  %v270_v0 = vrot.slane %v269_v43, 2 }
  0x99   :  { %523 = vpow2.f32 %v154_v12  ;;  %v195_v25 = vmul.f32 %v795_v19, %v179_v11  ;;  %v802_v28 = vpop.eup %521  ;;  %v212_v10 = vrot.slane %v211_v55, 1  ;;  %v265_v15 = vadd.f32 %v264_v60, %v263_v31  ;;  %v182_v31 = vld [vmem:[%s890_s1 + $0x30] sm:$0xff] }
  0x9a   :  { %525 = vpow2.f32 %v168_v17  ;;  %v196_v37 = vmul.f32 %v802_v28, %v180_v27  ;;  %v274_v44 = vrot.slane %v203_v24, 4  ;;  %v218_v16 = vrot.slane %v217_v61, 1  ;;  %v190_v17 = vld [vmem:[%s890_s1 + $0x70] sm:$0xff] }
  0x9b   :  { %v226_v32 = vrot.slane %v195_v25, 4  ;;  %527 = vpow2.f32 %v170_v21  ;;  %v271_v20 = vadd.f32 %v270_v0, %v269_v43  ;;  %v213_v43 = vadd.f32 %v212_v10, %v211_v55  ;;  %v191_v55 = vld [vmem:[%s890_s1 + $0x78] sm:$0xff] }
  0x9c   :  { %v122_v33 = vpop.xlane.xlu1 %121  ;;  %v98_v35 = vpop.xlane.xlu0 %97  ;;  %v232_v49 = vrot.slane %v196_v37, 4  ;;  %v275_v7 = vadd.f32 %v274_v44, %v203_v24 }
  0x9d   :  { %v142_v39 = vmul.f32 %v689_v2, %v122_v33  ;;  %v101_v40 = vpop.xlane.xlu2 %100  ;;  %v134_v45 = vmul.f32 %v689_v2, %v98_v35  ;;  %v227_v48 = vadd.f32 %v226_v32, %v195_v25  ;;  %v261_v33 = vadd.f32 %v260_v54, %v804_v29 }
  0x9e   :  { %v135_v53 = vmul.f32 %v689_v2, %v101_v40  ;;  %v233_v3 = vadd.f32 %v232_v49, %v196_v37  ;;  %v276_v25 = vrot.slane %v275_v7, 2  ;;  %v224_v35 = vrot.slane %v223_v6, 1 }
  0x9f   :  { %v812_v47 = vpop.eup %523  ;;  %v172_v52 = vmul.f32 1.442695, %v142_v39  ;;  %v156_v58 = vmul.f32 1.442695, %v134_v45  ;;  %v228_v8 = vrot.slane %v227_v48, 2  ;;  %v219_v39 = vadd.f32 %v218_v16, %v217_v61 }
  0xa0   :  { %v197_v56 = vmul.f32 %v812_v47, %v181_v38  ;;  %v820_v59 = vpop.eup %525  ;;  %v158_v63 = vmul.f32 1.442695, %v135_v53  ;;  %v234_v21 = vrot.slane %v233_v3, 2  ;;  %v266_v38 = vrot.slane %v265_v15, 1 }
  0xa1   :  { %529 = vpow2.f32 %v172_v52  ;;  %v204_v1 = vmul.f32 %v820_v59, %v188_v51  ;;  %v826_v5 = vpop.eup %527  ;;  %v229_v27 = vadd.f32 %v228_v8, %v227_v48  ;;  %v272_v49 = vrot.slane %v271_v20, 1 }
  0xa2   :  { %v238_v4 = vrot.slane %v197_v56, 4  ;;  %531 = vpow2.f32 %v156_v58  ;;  %v205_v13 = vmul.f32 %v826_v5, %v189_v62  ;;  %v235_v44 = vadd.f32 %v234_v21, %v233_v3 }
  0xa3   :  { %v280_v12 = vrot.slane %v204_v1, 4  ;;  %533 = vpow2.f32 %v158_v63  ;;  %v277_v51 = vadd.f32 %v276_v25, %v275_v7  ;;  %v230_v52 = vrot.slane %v229_v27, 1 }
  0xa4   :  { %v239_v11 = vadd.f32 %v238_v4, %v197_v56  ;;  %v125_v14 = vpop.xlane.xlu0 %124  ;;  %v286_v23 = vrot.slane %v205_v13, 4  ;;  %v225_v61 = vadd.f32 %v224_v35, %v223_v6  ;;  %v267_v62 = vadd.f32 %v266_v38, %v265_v15 }
  0xa5   :  { %v143_v18 = vmul.f32 %v689_v2, %v125_v14  ;;  %v281_v22 = vadd.f32 %v280_v12, %v204_v1  ;;  %v341_v0 = vsel %vm340_vm1, %v219_v39, %v213_v43  ;;  %v236_v1 = vrot.slane %v235_v44, 1 }
  0xa6   :  { %v240_v30 = vrot.slane %v239_v11, 2  ;;  %v287_v36 = vadd.f32 %v286_v23, %v205_v13  ;;  %v273_v10 = vadd.f32 %v272_v49, %v271_v20  ;;  %v231_v12 = vadd.f32 %v230_v52, %v229_v27 }
  0xa7   :  { %v833_v24 = vpop.eup %529  ;;  %v174_v32 = vmul.f32 1.442695, %v143_v18  ;;  %v282_v40 = vrot.slane %v281_v22, 2  ;;  %v237_v25 = vadd.f32 %v236_v1, %v235_v44 }
  0xa8   :  { %v206_v2 = vmul.f32 %v833_v24, %v190_v17  ;;  %v840_v37 = vpop.eup %531  ;;  %v241_v53 = vadd.f32 %v240_v30, %v239_v11  ;;  %v288_v54 = vrot.slane %v287_v36, 2  ;;  %v278_v11 = vrot.slane %v277_v51, 1 }
  0xa9   :  { %535 = vpow2.f32 %v174_v32  ;;  %v198_v29 = vmul.f32 %v840_v37, %v182_v31  ;;  %v846_v48 = vpop.eup %533  ;;  %v283_v63 = vadd.f32 %v282_v40, %v281_v22  ;;  %v343_v17 = vsel %vm342_vm2, %v225_v61, %v341_v0 }
  0xaa   :  { %v292_v45 = vrot.slane %v206_v2, 4  ;;  %v199_v60 = vmul.f32 %v846_v48, %v183_v41  ;;  %v242_v13 = vrot.slane %v241_v53, 1  ;;  %v289_v16 = vadd.f32 %v288_v54, %v287_v36 }
  0xab   :  { %v244_v58 = vrot.slane %v198_v29, 4  ;;  %v284_v18 = vrot.slane %v283_v63, 1  ;;  %v354_v22 = vsel %vm340_vm1, %v267_v62, %v261_v33  ;;  %v345_v20 = vsel %vm344_vm3, %v231_v12, %v343_v17 }
  0xac   :  { %v293_v56 = vadd.f32 %v292_v45, %v206_v2  ;;  %v250_v4 = vrot.slane %v199_v60, 4  ;;  %v243_v32 = vadd.f32 %v242_v13, %v241_v53  ;;  %v279_v27 = vadd.f32 %v278_v11, %v277_v51 }
  0xad   :  { %v245_v3 = vadd.f32 %v244_v58, %v198_v29  ;;  %v290_v38 = vrot.slane %v289_v16, 1  ;;  %v285_v36 = vadd.f32 %v284_v18, %v283_v63  ;;  %v355_v41 = vsel %vm342_vm2, %v273_v10, %v354_v22 }
  0xae   :  { %v294_v7 = vrot.slane %v293_v56, 2  ;;  %v251_v15 = vadd.f32 %v250_v4, %v199_v60  ;;  %v347_v44 = vsel %vm346_vm4, %v237_v25, %v345_v20  ;;  %v356_v49 = vsel %vm344_vm3, %v279_v27, %v355_v41 }
  0xaf   :  { %v853_v8 = vpop.eup %535  ;;  %v246_v14 = vrot.slane %v245_v3, 2  ;;  %v349_v29 = vsel %vm348_vm5, %v243_v32, %v347_v44  ;;  %v291_v53 = vadd.f32 %v290_v38, %v289_v16  ;;  %v357_v58 = vsel %vm346_vm4, %v285_v36, %v356_v49 }
  0xb0   :  { %v207_v6 = vmul.f32 %v853_v8, %v191_v55  ;;  %v295_v21 = vadd.f32 %v294_v7, %v293_v56  ;;  %v252_v31 = vrot.slane %v251_v15, 2 }
  0xb1   :  { %v247_v30 = vadd.f32 %v246_v14, %v245_v3  ;;  %v358_v63 = vsel %vm348_vm5, %v291_v53, %v357_v58  ;;  %v504_v3 = vld [vmem:[%s894_s5] ss:$0 sm:$0xff]  ;;  %s563_s5 = smov [#allocation3]  }
  0xb2   :  { %v298_v23 = vrot.slane %v207_v6, 4  ;;  %v253_v2 = vadd.f32 %v252_v31, %v251_v15  ;;  %v296_v40 = vrot.slane %v295_v21, 1  ;;  %s470_s15 = sshll.u32 %s563_s5, 4  ;;  %s471_s15 = int_to_ptr.vmem [resolvable:$true] %s470_s15 }
  0xb3   :  { %v248_v35 = vrot.slane %v247_v30, 1 }
  0xb4   :  { %v299_v39 = vadd.f32 %v298_v23, %v207_v6  ;;  %v254_v33 = vrot.slane %v253_v2, 1  ;;  %v297_v56 = vadd.f32 %v296_v40, %v295_v21 }
  0xb5   :  { %v249_v43 = vadd.f32 %v248_v35, %v247_v30 }
  0xb6   :  { %v300_v45 = vrot.slane %v299_v39, 2  ;;  %v255_v51 = vadd.f32 %v254_v33, %v253_v2  ;;  %v359_v55 = vsel %vm350_vm6, %v297_v56, %v358_v63 }
  0xb7   :  { %v351_v52 = vsel %vm350_vm6, %v249_v43, %v349_v29 }
  0xb8   :  { %v301_v54 = vadd.f32 %v300_v45, %v299_v39  ;;  %v353_v60 = vsel %vm352_vm7, %v255_v51, %v351_v52 }
  0xb9   :  { %379 = vmatmul.f32.vlgmr.msra.gmra.mxu0 %v353_v60 }
  0xba   :  { %v302_v61 = vrot.slane %v301_v54, 1 }
  0xbc   :  { %v303_v62 = vadd.f32 %v302_v61, %v301_v54 }
  0xbe   :  { %v360_v0 = vsel %vm352_vm7, %v303_v62, %v359_v55 }
  0xbf   :  { %382 = vmatmul.f32.vlgmr.msra.gmra.mxu1 %v360_v0 }
 0x136   :  { %v380_v4 = vpop.f32.mrf.mxu0 }
 0x137   :  { %v381_v1 = vadd.f32 %v504_v3, %v380_v4 }
 0x139   :  { %v388_v7 = vrot.slane %v381_v1, 1  ;;  %v389_v10 = vrot.slane %v381_v1, 2  ;;  %v390_v11 = vrot.slane %v381_v1, 3  ;;  %v391_v12 = vrot.slane %v381_v1, 4 }
 0x13a   :  { %v392_v13 = vrot.slane %v381_v1, 5  ;;  %v393_v6 = vrot.slane %v381_v1, 6  ;;  %v394_v14 = vrot.slane %v381_v1, 7  ;;  %v402_v15 = vperm.slane %v381_v1, 0 }
 0x13b   :  { %v403_v16 = vperm.slane %v388_v7, 0  ;;  %v404_v17 = vperm.slane %v389_v10, 0  ;;  %v405_v18 = vperm.slane %v390_v11, 0  ;;  %v406_v21 = vperm.slane %v391_v12, 0 }
 0x13c   :  { %v383_v22 = vpop.f32.mrf.mxu1  ;;  %v407_v23 = vperm.slane %v392_v13, 0  ;;  %v408_v25 = vperm.slane %v393_v6, 0  ;;  %v409_v30 = vperm.slane %v394_v14, 0  ;;  %v434_v31 = vmul.f32 %v730_v34, %v402_v15 }
 0x13d   :  { %v435_v32 = vmul.f32 %v749_v46, %v403_v16  ;;  %v436_v20 = vmul.f32 %v744_v42, %v404_v17  ;;  %v437_v27 = vmul.f32 %v795_v19, %v405_v18  ;;  %v438_v35 = vmul.f32 %v802_v28, %v406_v21 }
 0x13e   :  { %450 = vst [vmem:[#allocation3] sm:$0xff] %v434_v31  ;;  %v384_v2 = vadd.f32 %v504_v3, %v383_v22  ;;  %v439_v38 = vmul.f32 %v812_v47, %v407_v23  ;;  %v440_v39 = vmul.f32 %v840_v37, %v408_v25  ;;  %v441_v36 = vmul.f32 %v846_v48, %v409_v30 }
 0x13f   :  { %451 = vst [vmem:[#allocation3 + $0x8] sm:$0xff] %v435_v32 }
 0x140   :  { %452 = vst [vmem:[#allocation3 + $0x10] sm:$0xff] %v436_v20  ;;  %v395_v40 = vrot.slane %v384_v2, 1  ;;  %v396_v34 = vrot.slane %v384_v2, 2  ;;  %v397_v41 = vrot.slane %v384_v2, 3  ;;  %v398_v46 = vrot.slane %v384_v2, 4 }
 0x141   :  { %453 = vst [vmem:[#allocation3 + $0x18] sm:$0xff] %v437_v27  ;;  %v399_v42 = vrot.slane %v384_v2, 5  ;;  %v400_v43 = vrot.slane %v384_v2, 6  ;;  %v401_v19 = vrot.slane %v384_v2, 7  ;;  %v410_v33 = vperm.slane %v384_v2, 0 }
 0x142   :  { %454 = vst [vmem:[#allocation3 + $0x20] sm:$0xff] %v438_v35  ;;  %v411_v28 = vperm.slane %v395_v40, 0  ;;  %v412_v44 = vperm.slane %v396_v34, 0  ;;  %v413_v45 = vperm.slane %v397_v41, 0  ;;  %v414_v47 = vperm.slane %v398_v46, 0 }
 0x143   :  { %455 = vst [vmem:[#allocation3 + $0x28] sm:$0xff] %v439_v38  ;;  %v415_v37 = vperm.slane %v399_v42, 0  ;;  %v442_v48 = vmul.f32 %v718_v26, %v410_v33  ;;  %v416_v29 = vperm.slane %v400_v43, 0  ;;  %v417_v52 = vperm.slane %v401_v19, 0 }
 0x144   :  { %456 = vst [vmem:[#allocation3 + $0x30] sm:$0xff] %v440_v39  ;;  %v443_v49 = vmul.f32 %v755_v50, %v411_v28  ;;  %v444_v51 = vmul.f32 %v768_v57, %v412_v44  ;;  %v445_v53 = vmul.f32 %v783_v9, %v413_v45  ;;  %v446_v54 = vmul.f32 %v820_v59, %v414_v47 }
 0x145   :  { %457 = vst [vmem:[#allocation3 + $0x38] sm:$0xff] %v441_v36  ;;  %v447_v56 = vmul.f32 %v826_v5, %v415_v37  ;;  %v448_v26 = vmul.f32 %v833_v24, %v416_v29  ;;  %v449_v50 = vmul.f32 %v853_v8, %v417_v52 }
 0x146   :  { %458 = vst [vmem:[#allocation3 + $0x40] sm:$0xff] %v442_v48 }
 0x147   :  { %459 = vst [vmem:[#allocation3 + $0x48] sm:$0xff] %v443_v49 }
 0x148   :  { %460 = vst [vmem:[#allocation3 + $0x50] sm:$0xff] %v444_v51 }
 0x149   :  { %461 = vst [vmem:[#allocation3 + $0x58] sm:$0xff] %v445_v53 }
 0x14a   :  { %462 = vst [vmem:[#allocation3 + $0x60] sm:$0xff] %v446_v54 }
 0x14b   :  { %463 = vst [vmem:[#allocation3 + $0x68] sm:$0xff] %v447_v56 }
 0x14c   :  { %464 = vst [vmem:[#allocation3 + $0x70] sm:$0xff] %v448_v26 }
 0x14d   :  { %465 = vst [vmem:[#allocation3 + $0x78] sm:$0xff] %v449_v50 }
 0x14e   :  { %478 = dma.vmem_to_hbm [thread:$0]  %s471_s15, 2048, %s473_s18, [#allocation4], %s564_s19, %s564_s19, %s565_s20  }
 0x14f   :  { %561 = dma.done.wait [#allocation4], 2048  }
 0x150   :  { %562 = vsyncadd [#allocation4], 4294965248 }
 0x151   :  { %483 = vsyncpa [#allocation4], 1 }

</bundles_post_ra>
